<compile_context>
chip_gen: v7x
topology: tpu7x:2x2x1
jax: 0.10.0
libtpu: 0.0.40
codegen_flags: <defaults>
</compile_context>

<pallas_src>
import jax
import jax.numpy as jnp
from jax import lax
from jax.experimental import pallas as pl
from jax.experimental.pallas import tpu as pltpu

MID = 512  # hard-coded branch width in the PyTorch module


def _matmul_bias_relu_kernel(p_ref, w_ref, bias_ref, out_ref):
    # (Cout, KKCp)bf16 @ (KKCp, HW)bf16 -> (Cout, HW)f32 ; HW (lane dim) is a
    # multiple of 128 -> unmasked vst; single lane-dense MXU matmul per image.
    y = jnp.dot(w_ref[...], p_ref[...], preferred_element_type=jnp.float32)
    y = y + bias_ref[...]                 # (Cout, 1) per-image bias, bcast over lanes
    out_ref[...] = jnp.maximum(y, 0.0).astype(out_ref.dtype)


def multi_atrous_forward(x_nhwc, params, ks):
    """x_nhwc: (B, H, W, Cin) float32. Returns (B, H, W, Cout) float32."""
    B, H, W, Cin = x_nhwc.shape
    w0, b0, w1, b1, w2, b2, wo1, bo1, wc, bc = params
    Cout = wc.shape[1]
    # 'same' + centering math below assumes odd kernel sizes (as in the test).
    assert all(k % 2 == 1 for k in ks), "even kernel sizes need asymmetric padding"
    K = max(ks)
    P = (K - 1) // 2
    HW = H * W
    KKC = K * K * Cin
    KKCp = ((KKC + 127) // 128) * 128     # pad contraction dim for clean MXU tiles

    # ---- exact weight folding: 3 K-convs -> concat -> 1x1 conv1 == one KxK conv ----
    def fold(w_i, i):
        Ki = w_i.shape[0]
        wc_i = wc[i * MID:(i + 1) * MID, :]                      # (MID, Cout)
        w_e = jnp.einsum('abcm,mn->abcn', w_i, wc_i)             # (Ki,Ki,Cin,Cout)
        pad = (K - Ki) // 2
        return jnp.pad(w_e, ((pad, pad), (pad, pad), (0, 0), (0, 0)))

    w_eff = fold(w0, 0) + fold(w1, 1) + fold(w2, 2)              # (K,K,Cin,Cout)
    wT = w_eff.reshape(KKC, Cout).T                              # (Cout, KKC), ky/kx/c row order
    wT = jnp.pad(wT, ((0, 0), (0, KKCp - KKC))).astype(jnp.bfloat16)
    b_eff = (b0 @ wc[:MID] + b1 @ wc[MID:2 * MID]
             + b2 @ wc[2 * MID:3 * MID] + bc)                    # (Cout,)

    # ---- global-pool branch in the wrapper (ReLU blocks folding; scalar-sized) ----
    pooled = jnp.mean(x_nhwc, axis=(1, 2))                       # (B, Cin)
    p = jnp.maximum(pooled @ wo1 + bo1, 0.0)                     # (B, MID)
    # nearest-interp of a 1x1 map is a pure broadcast -> just a per-image bias.
    bias = (p @ wc[3 * MID:] + b_eff)[:, :, None]                # (B, Cout, 1) f32

    # ---- direct (B, KKCp, HW) bf16 im2col (no concat->swapaxes roundtrip) ----
    x_chw = jnp.transpose(x_nhwc, (0, 3, 1, 2)).astype(jnp.bfloat16)  # (B,Cin,H,W), tiny
    xp = jnp.pad(x_chw, ((0, 0), (0, 0), (P, P), (P, P)))
    rows = [xp[:, :, ky:ky + H, kx:kx + W].reshape(B, Cin, HW)   # tap-major, chan-minor
            for ky in range(K) for kx in range(K)]               # (matches wT row order)
    if KKCp > KKC:
        rows.append(jnp.zeros((B, KKCp - KKC, HW), jnp.bfloat16))
    patches_t = jnp.concatenate(rows, axis=1)                    # (B, KKCp, HW) bf16

    grid_spec = pltpu.PrefetchScalarGridSpec(
        num_scalar_prefetch=0,
        grid=(B,),
        in_specs=[
            pl.BlockSpec((pl.Squeezed(), KKCp, HW), lambda b: (b, 0, 0)),
            pl.BlockSpec((Cout, KKCp), lambda b: (0, 0)),        # constant-index, stays resident
            pl.BlockSpec((pl.Squeezed(), Cout, 1), lambda b: (b, 0, 0)),
        ],
        out_specs=pl.BlockSpec((pl.Squeezed(), Cout, HW), lambda b: (b, 0, 0)),
    )

    out_t = pl.pallas_call(
        _matmul_bias_relu_kernel,
        out_shape=jax.ShapeDtypeStruct((B, Cout, HW), x_nhwc.dtype),
        grid_spec=grid_spec,
        compiler_params=pltpu.CompilerParams(
            dimension_semantics=("parallel",)),                  # 2 TCs on v7x for B>=2
    )(patches_t, wT, bias)

    # (B, Cout, HW) -> (B, H, W, Cout): wrapper-side layout plumbing
    return jnp.swapaxes(out_t, 1, 2).reshape(B, H, W, Cout)


def init_params(key, in_chans, out_chans, ks):
    keys = jax.random.split(key, 10)

    def conv_w(k, K, cin, cout):
        scale = 1.0 / (K * K * cin) ** 0.5
        return scale * jax.random.normal(k, (K, K, cin, cout), jnp.float32)

    w0 = conv_w(keys[0], ks[0], in_chans, MID)
    b0 = 0.05 * jax.random.normal(keys[1], (MID,), jnp.float32)
    w1 = conv_w(keys[2], ks[1], in_chans, MID)
    b1 = 0.05 * jax.random.normal(keys[3], (MID,), jnp.float32)
    w2 = conv_w(keys[4], ks[2], in_chans, MID)
    b2 = 0.05 * jax.random.normal(keys[5], (MID,), jnp.float32)
    wo1 = (1.0 / in_chans ** 0.5) * jax.random.normal(
        keys[6], (in_chans, MID), jnp.float32)                   # 1x1 conv (o1)
    bo1 = 0.05 * jax.random.normal(keys[7], (MID,), jnp.float32)
    wc = (1.0 / (4 * MID) ** 0.5) * jax.random.normal(
        keys[8], (4 * MID, out_chans), jnp.float32)              # 1x1 conv (conv1)
    bc = 0.05 * jax.random.normal(keys[9], (out_chans,), jnp.float32)
    return (w0, b0, w1, b1, w2, b2, wo1, bo1, wc, bc)


def ref_forward(x, params, ks):
    """Pure-JAX reference (NHWC), mirroring the PyTorch forward exactly."""
    w0, b0, w1, b1, w2, b2, wo1, bo1, wc, bc = params
    B, H, W, Cin = x.shape

    def conv_same(x, w, b):
        y = lax.conv_general_dilated(
            x, w, window_strides=(1, 1), padding='SAME',
            dimension_numbers=('NHWC', 'HWIO', 'NHWC'))
        return y + b

    x0 = conv_same(x, w0, b0)
    x1 = conv_same(x, w1, b1)
    x2 = conv_same(x, w2, b2)
    pooled = jnp.mean(x, axis=(1, 2))                            # (B, Cin)
    p = jnp.maximum(pooled @ wo1 + bo1, 0.0)                     # (B, MID)
    x3 = jnp.broadcast_to(p[:, None, None, :], (B, H, W, MID))
    cat = jnp.concatenate([x0, x1, x2, x3], axis=-1)
    y = jnp.einsum('bhwc,cd->bhwd', cat, wc) + bc
    return jnp.maximum(y, 0.0)


if __name__ == "__main__":
    B, Cin, H, W = 2, 4, 16, 16
    Cout = 32
    ks = (3, 5, 7)  # "dilations" are used as kernel sizes in the PyTorch module

    key = jax.random.PRNGKey(0)
    kx, kp = jax.random.split(key)
    x_nchw = jax.random.normal(kx, (B, Cin, H, W), jnp.float32)  # PyTorch-style input
    x = jnp.transpose(x_nchw, (0, 2, 3, 1))                      # -> NHWC for the kernel

    params = init_params(kp, Cin, Cout, ks)

    out = multi_atrous_forward(x, params, ks)
    out = jax.block_until_ready(out)

    ref = ref_forward(x, params, ks)
    # bf16 MXU operands (f32 accumulation) on a ~196-deep contraction: expected
    # max normalized error ~1e-3; assert with margin.  Real bugs give O(1) error.
    err = float(jnp.max(jnp.abs(out - ref)) / jnp.maximum(1.0, jnp.max(jnp.abs(ref))))
    assert out.shape == (B, H, W, Cout), out.shape
    assert err < 1e-2, f"mismatch vs reference: rel-max err {err}"
    print("KERNEL_OK")
</pallas_src>

<mosaic_0001>
module attributes {stable_mosaic.version = 11 : i64} {
  func.func @_matmul_bias_relu_kernel(%arg0: i32, %arg1: memref<1x256x256xbf16, #tpu.memory_space<vmem>>, %arg2: memref<32x256xbf16, #tpu.memory_space<vmem>>, %arg3: memref<1x32x1xf32, #tpu.memory_space<vmem>>, %arg4: memref<1x32x256xf32, #tpu.memory_space<vmem>>) attributes {dimension_semantics = [#tpu.dimension_semantics<parallel>], iteration_bounds = array<i64: 2>, scalar_prefetch = 0 : i64, scratch_operands = 0 : i64, tpu.core_type = #tpu.core_type<tc>, window_params = [{transform_indices = @transform_0, window_bounds = array<i64: 1, 256, 256>}, {pipeline_mode = #tpu.pipeline_mode<synchronous>, transform_indices = @transform_1, window_bounds = array<i64: 32, 256>}, {transform_indices = @transform_2, window_bounds = array<i64: 1, 32, 1>}, {transform_indices = @transform_3, window_bounds = array<i64: 1, 32, 256>}]} {
    %c0 = arith.constant 0 : index
    %c0_0 = arith.constant 0 : index
    %0 = vector.load %arg2[%c0, %c0_0] : memref<32x256xbf16, #tpu.memory_space<vmem>>, vector<32x256xbf16>
    %c0_1 = arith.constant 0 : index
    %c0_2 = arith.constant 0 : index
    %c0_3 = arith.constant 0 : index
    %1 = vector.load %arg1[%c0_1, %c0_2, %c0_3] : memref<1x256x256xbf16, #tpu.memory_space<vmem>>, vector<1x256x256xbf16>
    %2 = vector.shape_cast %1 : vector<1x256x256xbf16> to vector<256x256xbf16>
    %cst = arith.constant dense<0.000000e+00> : vector<32x256xf32>
    %3 = tpu.matmul %0, %2, %cst {dimension_numbers = #tpu.dot_dimension_numbers<[1], [0], [0], [1], [0, 0, 1, 1], [], []>} : vector<32x256xbf16>, vector<256x256xbf16>, vector<32x256xf32> -> vector<32x256xf32>
    %c0_4 = arith.constant 0 : index
    %c0_5 = arith.constant 0 : index
    %c0_6 = arith.constant 0 : index
    %4 = vector.load %arg3[%c0_4, %c0_5, %c0_6] : memref<1x32x1xf32, #tpu.memory_space<vmem>>, vector<1x32x1xf32>
    %5 = vector.shape_cast %4 : vector<1x32x1xf32> to vector<32x1xf32>
    %6 = vector.broadcast %5 : vector<32x1xf32> to vector<32x256xf32>
    %7 = arith.addf %3, %6 : vector<32x256xf32>
    %cst_7 = arith.constant 0.000000e+00 : f32
    %8 = vector.broadcast %cst_7 : f32 to vector<32x256xf32>
    %9 = arith.maximumf %7, %8 : vector<32x256xf32>
    %c0_8 = arith.constant 0 : index
    %c0_9 = arith.constant 0 : index
    %c0_10 = arith.constant 0 : index
    %10 = vector.load %arg4[%c0_8, %c0_9, %c0_10] : memref<1x32x256xf32, #tpu.memory_space<vmem>>, vector<1x32x256xf32>
    %11 = vector.shape_cast %10 : vector<1x32x256xf32> to vector<32x256xf32>
    %12 = vector.shape_cast %9 : vector<32x256xf32> to vector<1x32x256xf32>
    tpu.vector_store %arg4[%c0_8, %c0_9, %c0_10], %12 {strides = array<i32>} : memref<1x32x256xf32, #tpu.memory_space<vmem>>, vector<1x32x256xf32>,
    return
  }
  func.func @transform_0(%arg0: i32) -> (i32, i32, i32) {
    %c0_i32 = arith.constant 0 : i32
    %c0_i32_0 = arith.constant 0 : i32
    %c0_i32_1 = arith.constant 0 : i32
    return %arg0, %c0_i32, %c0_i32_0 : i32, i32, i32
  }
  func.func @transform_1(%arg0: i32) -> (i32, i32) {
    %c0_i32 = arith.constant 0 : i32
    %c0_i32_0 = arith.constant 0 : i32
    %c0_i32_1 = arith.constant 0 : i32
    return %c0_i32, %c0_i32_0 : i32, i32
  }
  func.func @transform_2(%arg0: i32) -> (i32, i32, i32) {
    %c0_i32 = arith.constant 0 : i32
    %c0_i32_0 = arith.constant 0 : i32
    %c0_i32_1 = arith.constant 0 : i32
    return %arg0, %c0_i32, %c0_i32_0 : i32, i32, i32
  }
  func.func @transform_3(%arg0: i32) -> (i32, i32, i32) {
    %c0_i32 = arith.constant 0 : i32
    %c0_i32_0 = arith.constant 0 : i32
    %c0_i32_1 = arith.constant 0 : i32
    return %arg0, %c0_i32, %c0_i32_0 : i32, i32, i32
  }
}

</mosaic_0001>

<bundles_post_ra>
// kernel: tpu_custom_call.1
= control target key start
LH: loop header
LB: loop body
LE: loop exit
PB: predicated region body
PF: predicated region fallthrough
CT: control target
= control target key end

     0   :  { %8 = vsyncpa [#allocation3], 0  ;;  %s1161_s0 = inlined_call_operand.hbm [shape: bf16[2,256,256], index: 0, kind: input, shape index: {}]   ;;  %s1162_s1 = inlined_call_operand.vmem [shape: bf16[32,256], index: 1, kind: input, shape index: {}]   ;;  %s1163_s2 = inlined_call_operand.vmem [shape: f32[2,32,1], index: 2, kind: input, shape index: {}]   ;;  %s1164_s3 = inlined_call_operand.hbm [shape: f32[2,32,256], index: 3, kind: output, shape index: {}]  }
   0x1   :  { %10 = vsyncpa [#allocation3 + $0x1], 0 }
   0x2   :  { %11 = vsyncpa [#allocation4], 0 }
   0x3   :  { %13 = vsyncpa [#allocation4 + $0x1], 0  ;;  %s936_s12 = smov 0   ;;  %s938_s13 = smov 0  }
   0x4   :  { %s940_s14 = smov 0   ;;  %s942_s15 = smov 0  }
   0x5 LB: > { %s957_s16 = sadd.s32 4294967295, %s907_s15   ;;  %s617_s17 = sadd.s32 4294967294, %s907_s15   ;;  %s907_s15 = sphi %s942_s15, %s1177_s15   ;;  %s903_s14 = sphi %s940_s14, %s1176_s14   ;;  %s899_s13 = sphi %s938_s13, %s1175_s13   ;;  %s895_s12 = sphi %s936_s12, %s1174_s12  }
   0x6   : > { %s961_s18 = sadd.s32 1, %s907_s15   ;;  %s26_s19 = sadd.s32 1, %s903_s14 }
   0x7   : > { %s23_s20 = ssub.s32 %s907_s15, %s961_s18  ;;  %p33_p0 = scmp.ne.s32.totalorder %s903_s14, %s899_s13 }
   0x8   : > { %p24_p1 = scmp.eq.s32.totalorder %s23_s20, 0  ;;  %p34_p2 = scmp.eq.s32.totalorder %s907_s15, 0 }
   0x9   : > { %p39_p3 = scmp.ne.s32.totalorder %s899_s13, %s895_s12  ;;  %p40_p4 = scmp.eq.s32.totalorder %s957_s16, 0 }
   0xa   : > { %s973_s21 = scalar_select %p24_p1, %s903_s14, %s26_s19  }
   0xb   : > { %p975_p5 = por %p34_p2, %p33_p0  ;;  %p979_p6 = por %p40_p4, %p39_p3 }
   0xc   : > { %p110_p7 = scmp.eq.s32.totalorder %s957_s16, 1  ;;  %p116_p8 = scmp.eq.s32.totalorder %s617_s17, 1 }
   0xd   : > { %p716_p10 = scmp.lt.s32.totalorder %s907_s15, 2  ;;  %s139_s26 = sand.u32 1, %s903_s14  }
   0xe   : > { %p986_p11 = por %p110_p7, %p33_p0  ;;  %p990_p12 = por %p116_p8, %p39_p3 }
   0xf   : > { %s669_s27 = sshll.u32 %s907_s15, 12  ;;  %s620_s28 = sshll.u32 %s139_s26, 8 }
  0x10   : > { %s1168_s24 = scalar_select %p986_p11, 1, 0 }
  0x11   : > { %s1169_s25 = scalar_select %p990_p12, 1, 0 }
  0x12   : > { %s999_s4 = scalar_lea.hbm %s1161_s0, %s669_s27  ;;  %s143_s5 = scalar_lea.vmem [#allocation2], %s620_s28 }
  0x13   : > { %s150_s6 = sshll.u32 %s143_s5, 4  ;;  %p1003_p13 = pnand %p716_p10, %p975_p5  ;;  %s1007_s6 = int_to_ptr.vmem [resolvable:$true] %s150_s6 }
  0x14   : > { %s1009_s8 = scalar_lea.sflag [#allocation3], %s139_s26  ;;  %s811_s9 = scalar_lea.hbm %s999_s4, 4096 }
  0x15   : > { %p812_p0 = scmp.ne.s32.totalorder %s999_s4, %s811_s9  ;;  %p813_p1 = pneg %p1003_p13 }
  0x16   : > { %s816_s17 = scalar_lea.hbm %s1161_s0, 8192  ;;  %p817_p4 = scmp.lt.u32.totalorder %s999_s4, %s1161_s0 }
  0x17   : > { %p814_p2 = pnand %p813_p1, %p812_p0  ;;  %p818_p5 = scmp.lt.u32.totalorder %s816_s17, %s811_s9 }
  0x18   : > { %p820_p8 = scmp.lt.u32.totalorder %s811_s9, %s999_s4 }
  0x19   : > { %p815_p3 = pneg %p814_p2  ;;  %p819_p7 = por %p818_p5, %p817_p4 }
  0x1b   : > { %p821_p10 = por %p820_p8, %p819_p7 }
  0x1d   : > { %p822_p9 = pnand %p821_p10, %p815_p3 }
  0x1f   : > { %825 = shalt.err (!%p822_p9)
}
  0x20   : > { %s826_s22 = scalar_lea.vmem %s1007_s6, 4096  ;;  %s909_s26 = smov [#allocation2]  }
  0x21   : > { %p827_p0 = scmp.ne.s32.totalorder %s1007_s6, %s826_s22  ;;  %s831_s27 = sshll.u32 %s909_s26, 4  ;;  %s832_s27 = int_to_ptr.vmem [resolvable:$false] %s831_s27 }
  0x22   : > { %s833_s28 = scalar_lea.vmem %s832_s27, 8192  ;;  %p834_p11 = scmp.lt.s32.totalorder %s1007_s6, %s832_s27 }
  0x23   : > { %p829_p2 = pnand %p827_p0, %p813_p1  ;;  %p835_p4 = scmp.lt.s32.totalorder %s833_s28, %s826_s22 }
  0x25   : > { %p830_p12 = pneg %p829_p2  ;;  %p836_p5 = por %p835_p4, %p834_p11 }
  0x27   : > { %p837_p7 = pnand %p836_p5, %p830_p12 }
  0x29   : > { %840 = shalt.err (!%p837_p7)
}
  0x2a   : > { %s910_s29 = smov 128   ;;  %s911_s30 = smov 8  }
  0x2b   : > { %711 = dma.hbm_to_vmem [thread:$0]  (!%p1003_p13), %s999_s4, 4096, %s1007_s6, %s1009_s8, %s910_s29, %s910_s29, %s911_s30  }
  0x2c   : > { %p623_p9 = scmp.ge.s32.totalorder %s907_s15, 1  ;;  %p166_p1 = scmp.lt.s32.totalorder %s907_s15, 3 }
  0x2e   : > { %p167_p3 = pnand %p623_p9, %p166_p1 }
  0x2f   : > { %s1040_s5 = sand.u32 (!%p167_p3), 1, %s899_s13  }
  0x30   : > { %170 = sbr.rel (%p167_p3) target bundleno = 356 (0x164), region = 32  ;;  %s624_s9 = sshll.u32 (!%p167_p3), %s1040_s5, 8 }
  0x31   : > { %s173_s10 = scalar_lea.sflag (!%p167_p3), [#allocation3], %s1040_s5  ;;  %s1044_s11 = scalar_lea.vmem (!%p167_p3), [#allocation2], %s624_s9 }
  0x37   : > { %886 = dma.done.wait (%p979_p6), %s173_s10, 4096  }
  0x38   : > { %888 = vsyncadd (%p979_p6), %s173_s10, 4294963200  ;;  %v912_v0 = vmov 0   ;;  %v757_v1 = vld [vmem:[%s1044_s11 + $0x4] ss:$8 sps:$4 sm:$0xff]   ;;  %v759_v2 = vld [vmem:[%s1044_s11] ss:$8 sps:$4 sm:$0xff]  }
  0x39   : > { %756 = vset.pattern.permute.xlu1 %v912_v0  ;;  %755 = vset.pattern.permute.xlu0 %v912_v0  ;;  %v760_v3 = vld [vmem:[%s1044_s11 + $0x14] ss:$8 sps:$4 sm:$0xff]   ;;  %v762_v4 = vld [vmem:[%s1044_s11 + $0x10] ss:$8 sps:$4 sm:$0xff]   ;;  %v763_v5 = vld [vmem:[%s1044_s11 + $0x24] ss:$8 sps:$4 sm:$0xff]  }
  0x3a   : > { %449 = vmatprep.subr.bf16.mxu0 %v757_v1  ;;  %672 = vmatprep.subr.bf16.mxu1 %v757_v1  ;;  %v765_v6 = vld [vmem:[%s1044_s11 + $0x20] ss:$8 sps:$4 sm:$0xff]   ;;  %v766_v7 = vld [vmem:[%s1044_s11 + $0x34] ss:$8 sps:$4 sm:$0xff]   ;;  %p204_p6 = scmp.lt.s32.totalorder %s957_s16, 1  ;;  %s625_s30 = sshll.u32 %s1040_s5, 6 }
  0x3b   : > { %450 = vmatpush1.bf16.msra.mxu0 %v759_v2  ;;  %688 = vmatpush1.bf16.msra.mxu1 %v759_v2  ;;  %v768_v8 = vld [vmem:[%s1044_s11 + $0x30] ss:$8 sps:$4 sm:$0xff]   ;;  %v769_v9 = vld [vmem:[%s1044_s11 + $0x44] ss:$8 sps:$4 sm:$0xff]   ;;  %v771_v10 = vld [vmem:[%s1044_s11 + $0x40] ss:$8 sps:$4 sm:$0xff]  }
  0x3c   : > { %451 = vmatprep.subr.bf16.mxu0 %v760_v3  ;;  %673 = vmatprep.subr.bf16.mxu1 %v760_v3  ;;  %s205_s23 = scalar_select %p204_p6, %s957_s16, 1  ;;  %v772_v11 = vld [vmem:[%s1044_s11 + $0x54] ss:$8 sps:$4 sm:$0xff]   ;;  %v774_v12 = vld [vmem:[%s1044_s11 + $0x50] ss:$8 sps:$4 sm:$0xff]  }
  0x3d   : > { %v775_v13 = vld [vmem:[%s1044_s11 + $0x64] ss:$8 sps:$4 sm:$0xff]   ;;  %v777_v15 = vld [vmem:[%s1044_s11 + $0x60] ss:$8 sps:$4 sm:$0xff]   ;;  %v810_v16 = vld [vmem:[%s1162_s1 + $0x14] ss:$8 sps:$4 sm:$0xff]  }
  0x3e   : > { %s670_s4 = sshll.u32 %s205_s23, 5  ;;  %v807_v14 = vld [vmem:[%s1162_s1 + $0x4] ss:$8 sps:$4 sm:$0xff]   ;;  %v778_v17 = vld [vmem:[%s1044_s11 + $0x74] ss:$8 sps:$4 sm:$0xff]   ;;  %491 = vmatprep.mubr.bf16.mxu1 %v810_v16  ;;  %s1100_s9 = scalar_lea.vmem [#allocation5], %s625_s30 }
  0x3f   : > { %452 = vmatpush1.bf16.msra.mxu0 %v762_v4  ;;  %689 = vmatpush1.bf16.msra.mxu1 %v762_v4  ;;  %s208_s8 = scalar_lea.vmem %s1163_s2, %s670_s4  ;;  %v780_v20 = vld [vmem:[%s1044_s11 + $0x70] ss:$8 sps:$4 sm:$0xff]   ;;  %v781_v23 = vld [vmem:[%s1044_s11 + $0x84] ss:$8 sps:$4 sm:$0xff]   ;;  %v783_v24 = vld [vmem:[%s1044_s11 + $0x80] ss:$8 sps:$4 sm:$0xff]  }
  0x40   : > { %453 = vmatprep.subr.bf16.mxu0 %v763_v5  ;;  %674 = vmatprep.subr.bf16.mxu1 %v763_v5  ;;  %v247_v18 = vld [vmem:[%s208_s8 + $0x10] sm:$0xff]  ;;  %v245_v19 = vld [vmem:[%s208_s8] sm:$0xff]  ;;  %v248_v21 = vld [vmem:[%s208_s8 + $0x18] sm:$0xff]  ;;  %s532_s10 = sshll.u32 %s1100_s9, 4  ;;  %s519_s6 = scalar_lea.sflag [#allocation4], %s1040_s5  ;;  %s1104_s10 = int_to_ptr.vmem [resolvable:$true] %s532_s10 }
  0x41   : > { %481 = vmatprep.mubr.bf16.mxu0 %v807_v14  ;;  %261 = vperm.xlu1 %756, %v247_v18   ;;  %v246_v22 = vld [vmem:[%s208_s8 + $0x8] sm:$0xff]  ;;  %v784_v25 = vld [vmem:[%s1044_s11 + $0x94] ss:$8 sps:$4 sm:$0xff]   ;;  %v786_v26 = vld [vmem:[%s1044_s11 + $0x90] ss:$8 sps:$4 sm:$0xff]   ;;  %s841_s7 = scalar_lea.vmem %s1104_s10, 1024 }
  0x42   : > { %251 = vperm.xlu0 %755, %v245_v19   ;;  %v787_v27 = vld [vmem:[%s1044_s11 + $0xa4] ss:$8 sps:$4 sm:$0xff]   ;;  %v789_v28 = vld [vmem:[%s1044_s11 + $0xa0] ss:$8 sps:$4 sm:$0xff]   ;;  %v790_v29 = vld [vmem:[%s1044_s11 + $0xb4] ss:$8 sps:$4 sm:$0xff]   ;;  %p842_p11 = scmp.ne.s32.totalorder %s1104_s10, %s841_s7 }
  0x43   : > { %454 = vmatpush1.bf16.msra.mxu0 %v765_v6  ;;  %690 = vmatpush1.bf16.msra.mxu1 %v765_v6  ;;  %v792_v30 = vld [vmem:[%s1044_s11 + $0xb0] ss:$8 sps:$4 sm:$0xff]   ;;  %v793_v31 = vld [vmem:[%s1044_s11 + $0xc4] ss:$8 sps:$4 sm:$0xff]   ;;  %v795_v32 = vld [vmem:[%s1044_s11 + $0xc0] ss:$8 sps:$4 sm:$0xff]  }
  0x44   : > { %455 = vmatprep.subr.bf16.mxu0 %v766_v7  ;;  %675 = vmatprep.subr.bf16.mxu1 %v766_v7  ;;  %v796_v33 = vld [vmem:[%s1044_s11 + $0xd4] ss:$8 sps:$4 sm:$0xff]   ;;  %v798_v34 = vld [vmem:[%s1044_s11 + $0xd0] ss:$8 sps:$4 sm:$0xff]   ;;  %v799_v35 = vld [vmem:[%s1044_s11 + $0xe4] ss:$8 sps:$4 sm:$0xff]  }
  0x45   : > { %266 = vperm.xlu1 %756, %v248_v21   ;;  %v801_v36 = vld [vmem:[%s1044_s11 + $0xe0] ss:$8 sps:$4 sm:$0xff]   ;;  %v802_v37 = vld [vmem:[%s1044_s11 + $0xf4] ss:$8 sps:$4 sm:$0xff]   ;;  %v804_v38 = vld [vmem:[%s1044_s11 + $0xf0] ss:$8 sps:$4 sm:$0xff]  }
  0x46   : > { %256 = vperm.xlu0 %755, %v246_v22   ;;  %v805_v39 = vld [vmem:[%s1162_s1] ss:$8 sps:$4 sm:$0xff]   ;;  %v808_v40 = vld [vmem:[%s1162_s1 + $0x10] ss:$8 sps:$4 sm:$0xff]   ;;  %s671_s11 = sshll.u32 %s957_s16, 10  ;;  %p1171_p12 = scmp.ne.s32.totalorder %s1168_s24, 0 }
  0x47   : > { %456 = vmatpush1.bf16.msra.mxu0 %v768_v8  ;;  %691 = vmatpush1.bf16.msra.mxu1 %v768_v8  ;;  %s1111_s4 = scalar_lea.hbm %s1164_s3, %s671_s11  ;;  %s913_s8 = smov [#allocation5]  }
  0x48   : > { %457 = vmatprep.subr.bf16.mxu0 %v769_v9  ;;  %676 = vmatprep.subr.bf16.mxu1 %v769_v9  ;;  %p843_p13 = pnand %p842_p11, %p1171_p12  ;;  %s845_s17 = sshll.u32 %s913_s8, 4  ;;  %s846_s17 = int_to_ptr.vmem [resolvable:$false] %s845_s17 }
  0x49   : > { %s847_s19 = scalar_lea.vmem %s846_s17, 2048  ;;  %p848_p10 = scmp.lt.s32.totalorder %s1104_s10, %s846_s17 }
  0x4a   : > { %p844_p8 = pneg %p843_p13  ;;  %p849_p0 = scmp.lt.s32.totalorder %s847_s19, %s841_s7 }
  0x4b   : > { %458 = vmatpush1.bf16.msra.mxu0 %v771_v10  ;;  %692 = vmatpush1.bf16.msra.mxu1 %v771_v10 }
  0x4c   : > { %459 = vmatprep.subr.bf16.mxu0 %v772_v11  ;;  %677 = vmatprep.subr.bf16.mxu1 %v772_v11  ;;  %p850_p2 = por %p849_p0, %p848_p10 }
  0x4e   : > { %p851_p4 = pnand %p850_p2, %p844_p8 }
  0x4f   : > { %460 = vmatpush1.bf16.msra.mxu0 %v774_v12  ;;  %693 = vmatpush1.bf16.msra.mxu1 %v774_v12 }
  0x50   : > { %461 = vmatprep.subr.bf16.mxu0 %v775_v13  ;;  %678 = vmatprep.subr.bf16.mxu1 %v775_v13 }
  0x53   : > { %462 = vmatpush1.bf16.msra.mxu0 %v777_v15  ;;  %694 = vmatpush1.bf16.msra.mxu1 %v777_v15 }
  0x54   : > { %463 = vmatprep.subr.bf16.mxu0 %v778_v17  ;;  %679 = vmatprep.subr.bf16.mxu1 %v778_v17 }
  0x57   : > { %464 = vmatpush1.bf16.msra.mxu0 %v780_v20  ;;  %695 = vmatpush1.bf16.msra.mxu1 %v780_v20 }
  0x58   : > { %465 = vmatprep.subr.bf16.mxu0 %v781_v23  ;;  %680 = vmatprep.subr.bf16.mxu1 %v781_v23 }
  0x5b   : > { %466 = vmatpush1.bf16.msra.mxu0 %v783_v24  ;;  %696 = vmatpush1.bf16.msra.mxu1 %v783_v24 }
  0x5c   : > { %467 = vmatprep.subr.bf16.mxu0 %v784_v25  ;;  %681 = vmatprep.subr.bf16.mxu1 %v784_v25 }
  0x5f   : > { %468 = vmatpush1.bf16.msra.mxu0 %v786_v26  ;;  %697 = vmatpush1.bf16.msra.mxu1 %v786_v26 }
  0x60   : > { %469 = vmatprep.subr.bf16.mxu0 %v787_v27  ;;  %682 = vmatprep.subr.bf16.mxu1 %v787_v27 }
  0x63   : > { %470 = vmatpush1.bf16.msra.mxu0 %v789_v28  ;;  %698 = vmatpush1.bf16.msra.mxu1 %v789_v28 }
  0x64   : > { %471 = vmatprep.subr.bf16.mxu0 %v790_v29  ;;  %683 = vmatprep.subr.bf16.mxu1 %v790_v29 }
  0x67   : > { %472 = vmatpush1.bf16.msra.mxu0 %v792_v30  ;;  %699 = vmatpush1.bf16.msra.mxu1 %v792_v30 }
  0x68   : > { %473 = vmatprep.subr.bf16.mxu0 %v793_v31  ;;  %684 = vmatprep.subr.bf16.mxu1 %v793_v31 }
  0x6b   : > { %474 = vmatpush1.bf16.msra.mxu0 %v795_v32  ;;  %700 = vmatpush1.bf16.msra.mxu1 %v795_v32 }
  0x6c   : > { %475 = vmatprep.subr.bf16.mxu0 %v796_v33  ;;  %685 = vmatprep.subr.bf16.mxu1 %v796_v33 }
  0x6f   : > { %476 = vmatpush1.bf16.msra.mxu0 %v798_v34  ;;  %701 = vmatpush1.bf16.msra.mxu1 %v798_v34 }
  0x70   : > { %477 = vmatprep.subr.bf16.mxu0 %v799_v35  ;;  %686 = vmatprep.subr.bf16.mxu1 %v799_v35 }
  0x73   : > { %478 = vmatpush1.bf16.msra.mxu0 %v801_v36  ;;  %702 = vmatpush1.bf16.msra.mxu1 %v801_v36 }
  0x74   : > { %479 = vmatprep.subr.bf16.mxu0 %v802_v37  ;;  %687 = vmatprep.subr.bf16.mxu1 %v802_v37 }
  0x77   : > { %480 = vmatpush1.bf16.msra.mxu0 %v804_v38  ;;  %703 = vmatpush1.bf16.msra.mxu1 %v804_v38 }
  0x7a   : > { %482 = vmatmul.mubr.bf16.vlgmr.msra.gmra.mrb[0].mxu0 %v805_v39  ;;  %492 = vmatmul.mubr.bf16.vlgmr.msra.gmra.mrb[0].mxu1 %v808_v40 }
  0xc0   : > { %v262_v41 = vpop.permute.xlu1 %261 }
  0xc1   : > { %v252_v42 = vpop.permute.xlu0 %251 }
  0xc4   : > { %v267_v43 = vpop.permute.xlu1 %266 }
  0xc5   : > { %v257_v44 = vpop.permute.xlu0 %256 }
 0x14d   : > { %v483_v45 = vpop.f32.mrb[0].mxu0  ;;  %v493_v46 = vpop.f32.mrb[0].mxu1 }
 0x14e   : > { %v484_v47 = vadd.f32 %v483_v45, %v252_v42  ;;  %v494_v48 = vadd.f32 %v493_v46, %v262_v41  ;;  %v485_v49 = vpop.f32.mrb[1].mxu0  ;;  %v495_v50 = vpop.f32.mrb[1].mxu1 }
 0x14f   : > { %v486_v51 = vadd.f32 %v485_v49, %v252_v42  ;;  %v496_v52 = vadd.f32 %v495_v50, %v262_v41  ;;  %v487_v53 = vpop.f32.mrb[2].mxu0  ;;  %v497_v54 = vpop.f32.mrb[2].mxu1 }
 0x150   : > { %v502_v55 = vmax.f32 %v484_v47, 0.0  ;;  %v506_v56 = vmax.f32 %v494_v48, 0.0  ;;  %v488_v57 = vadd.f32 %v487_v53, %v257_v44  ;;  %v498_v58 = vadd.f32 %v497_v54, %v267_v43  ;;  %v489_v59 = vpop.f32.mrb[3].mxu0  ;;  %v499_v60 = vpop.f32.mrb[3].mxu1 }
 0x151   : > { %v503_v61 = vmax.f32 %v486_v51, 0.0  ;;  %v507_v62 = vmax.f32 %v496_v52, 0.0  ;;  %v490_v63 = vadd.f32 %v489_v59, %v257_v44  ;;  %v500_v0 = vadd.f32 %v499_v60, %v267_v43 }
 0x152   : > { %510 = vst [vmem:[%s1100_s9] sm:$0xff] %v502_v55  ;;  %514 = vst [vmem:[%s1100_s9 + $0x20] sm:$0xff] %v506_v56  ;;  %v504_v1 = vmax.f32 %v488_v57, 0.0  ;;  %v508_v2 = vmax.f32 %v498_v58, 0.0 }
 0x153   : > { %511 = vst [vmem:[%s1100_s9 + $0x8] sm:$0xff] %v503_v61  ;;  %515 = vst [vmem:[%s1100_s9 + $0x28] sm:$0xff] %v507_v62  ;;  %v505_v3 = vmax.f32 %v490_v63, 0.0  ;;  %v509_v4 = vmax.f32 %v500_v0, 0.0 }
 0x154   : > { %512 = vst [vmem:[%s1100_s9 + $0x10] sm:$0xff] %v504_v1  ;;  %516 = vst [vmem:[%s1100_s9 + $0x30] sm:$0xff] %v508_v2 }
 0x155   : > { %513 = vst [vmem:[%s1100_s9 + $0x18] sm:$0xff] %v505_v3  ;;  %517 = vst [vmem:[%s1100_s9 + $0x38] sm:$0xff] %v509_v4 }
 0x156   : > { %854 = shalt.err (!%p851_p4)
}
 0x157   : > { %s855_s20 = scalar_lea.hbm %s1111_s4, 1024  ;;  %s859_s27 = scalar_lea.hbm %s1164_s3, 2048 }
 0x158   : > { %p856_p5 = scmp.ne.s32.totalorder %s1111_s4, %s855_s20  ;;  %p860_p1 = scmp.lt.u32.totalorder %s1111_s4, %s1164_s3 }
 0x159   : > { %p861_p3 = scmp.lt.u32.totalorder %s859_s27, %s855_s20  ;;  %p863_p11 = scmp.lt.u32.totalorder %s855_s20, %s1111_s4 }
 0x15a   : > { %p857_p7 = pnand %p856_p5, %p1171_p12 }
 0x15b   : > { %p862_p6 = por %p861_p3, %p860_p1 }
 0x15c   : > { %p858_p9 = pneg %p857_p7 }
 0x15d   : > { %p864_p13 = por %p863_p11, %p862_p6 }
 0x15f   : > { %p865_p8 = pnand %p864_p13, %p858_p9 }
 0x161   : > { %868 = shalt.err (!%p865_p8)
}
 0x162   : > { %s914_s30 = smov 256   ;;  %s915_s9 = smov 16  }
 0x163   : > { %706 = dma.vmem_to_hbm [thread:$0]  (%p1171_p12), %s1104_s10, 1024, %s1111_s4, %s519_s6, %s914_s30, %s914_s30, %s915_s9  }
 0x164 PF: > { %s547_s11 = sand.u32 1, %s895_s12   ;;  %p1172_p10 = scmp.ne.s32.totalorder %s1169_s25, 0 }
 0x165   : > { %p1173_p0 = scmp.ge.s32.totalorder %s907_s15, 2  ;;  %s548_s16 = scalar_lea.sflag [#allocation4], %s547_s11 }
 0x167   : > { %p713_p2 = pnand %p1173_p0, %p1172_p10 }
 0x169   : > { %890 = dma.done.wait (!%p713_p2), %s548_s16, 1024  }
 0x16a   : > { %892 = vsyncadd (!%p713_p2), %s548_s16, 4294966272  ;;  %p16_p4 = scmp.ge.s32.totalorder %s961_s18, 4   ;;  %s1174_s12 = smov %s899_s13 }
 0x16b   : > { %s1175_s13 = smov %s903_s14  ;;  %s1176_s14 = smov %s973_s21 }
 0x16c   : > { %s1177_s15 = smov %s961_s18  ;;  %18 = sbr.rel (!%p16_p4) target bundleno = 5 (0x5), region = 80 }
 0x173   :  { %553 = vsyncpa [#allocation3], 1 }
 0x174   :  { %555 = vsyncpa [#allocation3 + $0x1], 1 }
 0x175   :  { %556 = vsyncpa [#allocation4], 1 }
 0x176   :  { %558 = vsyncpa [#allocation4 + $0x1], 1 }

</bundles_post_ra>
